<compile_context>
chip_gen: v5e
topology: v5e:2x2
jax: 0.10.0
libtpu: 0.0.40
codegen_flags: <defaults>
</compile_context>

<pallas_src>
import jax
import jax.numpy as jnp
from jax.experimental import pallas as pl
from jax.experimental.pallas import tpu as pltpu


def siamese_kernel(x1_ref, x2_ref,
                   w1_ref, b1_ref, w2_ref, b2_ref, w3_ref, b3_ref,
                   wv_ref, bv_ref,
                   out_ref):
    """One batch-tile of the full siamese forward pass (all big matmuls on MXU)."""
    tb = x1_ref.shape[0]
    mm = w1_ref.dtype                      # matmul operand dtype (bf16 or f32)

    # Cast happens here (free on the VPU), not in the wrapper; stack both
    # towers so each fc1 weight streams through the MXU once per tile.
    xs = jnp.concatenate([x1_ref[...].astype(mm), x2_ref[...].astype(mm)],
                         axis=0)                                   # (2*tb, INP)

    # fc1: Linear(INP,256) -> ReLU -> Linear(256,128) -> ReLU -> Linear(128,OUT)
    # Bias-add + ReLU + cast fused: intermediates carried in the matmul dtype.
    h = jnp.dot(xs, w1_ref[...], preferred_element_type=jnp.float32) + b1_ref[...]
    h = jnp.maximum(h, 0.0).astype(mm)                             # (2*tb, 256)
    h = jnp.dot(h, w2_ref[...], preferred_element_type=jnp.float32) + b2_ref[...]
    h = jnp.maximum(h, 0.0).astype(mm)                             # (2*tb, 128)
    e = jnp.dot(h, w3_ref[...], preferred_element_type=jnp.float32) + b3_ref[...]

    dist = jnp.abs(e[:tb, :] - e[tb:, :])                          # (tb, OUT)

    # fc2 + olayer folded (exact) into one (OUT,1) vector + scalar bias in the
    # wrapper.  VPU multiply + sublane reduce instead of an M=1 MXU dot; the
    # result is a lane-dense (1, tb) row -> unmasked vector stores.
    logits = jnp.sum(dist.T * wv_ref[...], axis=0, keepdims=True)  # (1, tb)
    out_ref[...] = jax.nn.sigmoid(logits + bv_ref[...]).astype(out_ref.dtype)


def _round_up(n, m):
    return ((n + m - 1) // m) * m


def _pick_tb(B):
    """Batch tile: whole (padded) batch when small; otherwise >= 2 tiles
    (v7x has 2 TensorCores), multiples of 128 (lane-dense output block),
    capped at 2048 to amortize per-grid-step overhead within VMEM budgets."""
    if B < 256:
        return _round_up(B, 16)
    return min(2048, _round_up(pl.cdiv(B, 2), 128))


def _vmem_limit_bytes(tb, inp_dim):
    """Explicit scoped-VMEM budget for the chosen tile (covers v5e's 16 MiB
    default); clamped to stay inside every chip's physical VMEM."""
    inputs = 2 * 2 * tb * inp_dim * 4                 # double-buffered f32 tiles
    acts = 2 * tb * (256 * 4 + 256 * 2 + 128 * 4 + 128 * 2 + 64 * 4)
    est = 2 * (inputs + acts) + (4 << 20)
    return int(min(48 << 20, max(32 << 20, est)))


def vanilla_siamese_forward(x1, x2, params, *, tb=None,
                            matmul_dtype=jnp.bfloat16):
    """Wrapper: tiles over batch (padding non-divisible batches); weights stay
    resident per tile; batch-sized inputs go to HBM/kernel as f32."""
    B, inp = x1.shape
    assert x2.shape == (B, inp)
    if tb is None:
        tb = _pick_tb(B)
    assert tb % 8 == 0, "batch tile must be a multiple of 8 (f32 sublane)"
    B_pad = _round_up(B, tb)
    grid = (B_pad // tb,)
    if grid[0] > 1:
        assert tb % 128 == 0, ("multi-tile grids need a 128-multiple tile for "
                               "the lane-dense (1, tb) output block")
    if B_pad != B:
        # Pad instead of one huge full-batch tile: keeps the per-tile working
        # set bounded; padded rows are sliced off below.
        pad = ((0, B_pad - B), (0, 0))
        x1 = jnp.pad(x1, pad)
        x2 = jnp.pad(x2, pad)

    # Fold fc2 + olayer[0] (exact: no nonlinearity between them):
    #   sigmoid((d @ Wf2 + bf2) @ Wo + bo) == sigmoid(d @ wv + bv)
    wv_col = (params["wf2"] @ params["wo"]).astype(jnp.float32)           # (OUT, 1)
    bv = (params["bf2"] @ params["wo"] + params["bo"]).astype(jnp.float32)  # (1, 1)

    mm = matmul_dtype
    # Only the tiny, batch-independent weights are cast in the wrapper.
    weight_args = (params["w1"].astype(mm), params["b1"],
                   params["w2"].astype(mm), params["b2"],
                   params["w3"].astype(mm), params["b3"],
                   wv_col, bv)

    def batch_spec():
        return pl.BlockSpec((tb, inp), lambda i: (i, 0))

    def full_spec(arr):
        # Constant index_map -> never re-DMA'd across grid steps.
        return pl.BlockSpec(arr.shape, lambda i: (0, 0))

    in_specs = [batch_spec(), batch_spec()] + [full_spec(a) for a in weight_args]

    # Lane-dense output: batch lives on the lane axis inside the kernel.
    out_spec = pl.BlockSpec((1, tb), lambda i: (0, i))

    out_row = pl.pallas_call(
        siamese_kernel,
        out_shape=jax.ShapeDtypeStruct((1, B_pad), jnp.float32),
        grid_spec=pltpu.PrefetchScalarGridSpec(
            num_scalar_prefetch=0,
            grid=grid,
            in_specs=in_specs,
            out_specs=out_spec,
        ),
        compiler_params=pltpu.CompilerParams(
            dimension_semantics=("parallel",),
            vmem_limit_bytes=_vmem_limit_bytes(tb, inp)),
    )(x1, x2, *weight_args)

    return out_row[0, :B].reshape(B, 1)


def init_params(key, inp_dim, out_dim):
    """Deterministic synthetic parameters (PyTorch Linear shapes, pre-transposed)."""
    ks = jax.random.split(key, 10)

    def linear(kw, kb, fan_in, fan_out):
        bound = 1.0 / jnp.sqrt(fan_in)
        w = jax.random.uniform(kw, (fan_in, fan_out), jnp.float32, -bound, bound)
        b = jax.random.uniform(kb, (1, fan_out), jnp.float32, -bound, bound)
        return w, b

    w1, b1 = linear(ks[0], ks[1], inp_dim, 256)        # fc1[0]: Linear(INP_DIM, 256)
    w2, b2 = linear(ks[2], ks[3], 256, 128)            # fc1[2]: Linear(256, 128)
    w3, b3 = linear(ks[4], ks[5], 128, out_dim)        # fc1[4]: Linear(128, OUT_DIM)
    wf2, bf2 = linear(ks[6], ks[7], out_dim, out_dim)  # fc2: Linear(OUT_DIM, OUT_DIM)
    wo, bo = linear(ks[8], ks[9], out_dim, 1)          # olayer[0]: Linear(OUT_DIM, 1)
    return dict(w1=w1, b1=b1, w2=w2, b2=b2, w3=w3, b3=b3,
                wf2=wf2, bf2=bf2, wo=wo, bo=bo)


def reference_forward(x1, x2, p):
    """Pure-JAX reference matching the PyTorch module semantics (unfused, f32)."""
    def fc1(x):
        h = jnp.maximum(x @ p["w1"] + p["b1"], 0.0)
        h = jnp.maximum(h @ p["w2"] + p["b2"], 0.0)
        return h @ p["w3"] + p["b3"]
    d = jnp.abs(fc1(x1) - fc1(x2))
    o = d @ p["wf2"] + p["bf2"]
    return jax.nn.sigmoid(o @ p["wo"] + p["bo"])


if __name__ == "__main__":
    INP_DIM, OUT_DIM = 32, 16

    key = jax.random.PRNGKey(0)
    k_params, k_x = jax.random.split(key)
    params = init_params(k_params, INP_DIM, OUT_DIM)

    # Small case (single tile) and a non-divisible case exercising the padded,
    # multi-tile (grid > 1, parallel) path.
    for batch in (16, 300):
        kx1, kx2 = jax.random.split(jax.random.fold_in(k_x, batch))
        x1 = jax.random.normal(kx1, (batch, INP_DIM), jnp.float32)
        x2 = jax.random.normal(kx2, (batch, INP_DIM), jnp.float32)

        ref = reference_forward(x1, x2, params)

        # Full-precision path for tight correctness checking.
        preds_f32 = vanilla_siamese_forward(x1, x2, params,
                                            matmul_dtype=jnp.float32)
        # Default fast path (bf16 matmul operands/activations, f32 accumulation).
        preds_bf16 = vanilla_siamese_forward(x1, x2, params)
        preds_f32, preds_bf16 = jax.block_until_ready((preds_f32, preds_bf16))

        assert preds_f32.shape == (batch, 1)
        assert preds_bf16.shape == (batch, 1)
        assert jnp.allclose(preds_f32, ref, atol=1e-4, rtol=1e-4), \
            f"f32 mismatch vs reference (batch={batch})"
        assert jnp.allclose(preds_bf16, ref, atol=3e-2, rtol=3e-2), \
            f"bf16 mismatch vs reference (batch={batch})"

    print("KERNEL_OK")
</pallas_src>

<mosaic_0001>
module attributes {stable_mosaic.version = 11 : i64} {
  func.func @siamese_kernel(%arg0: i32, %arg1: memref<16x32xf32, #tpu.memory_space<vmem>>, %arg2: memref<16x32xf32, #tpu.memory_space<vmem>>, %arg3: memref<32x256xf32, #tpu.memory_space<vmem>>, %arg4: memref<1x256xf32, #tpu.memory_space<vmem>>, %arg5: memref<256x128xf32, #tpu.memory_space<vmem>>, %arg6: memref<1x128xf32, #tpu.memory_space<vmem>>, %arg7: memref<128x16xf32, #tpu.memory_space<vmem>>, %arg8: memref<1x16xf32, #tpu.memory_space<vmem>>, %arg9: memref<16x1xf32, #tpu.memory_space<vmem>>, %arg10: memref<1x1xf32, #tpu.memory_space<vmem>>, %arg11: memref<1x16xf32, #tpu.memory_space<vmem>>) attributes {dimension_semantics = [#tpu.dimension_semantics<parallel>], iteration_bounds = array<i64: 1>, scalar_prefetch = 0 : i64, scratch_operands = 0 : i64, tpu.core_type = #tpu.core_type<tc>, window_params = [{transform_indices = @transform_0, window_bounds = array<i64: 16, 32>}, {transform_indices = @transform_1, window_bounds = array<i64: 16, 32>}, {pipeline_mode = #tpu.pipeline_mode<synchronous>, transform_indices = @transform_2, window_bounds = array<i64: 32, 256>}, {pipeline_mode = #tpu.pipeline_mode<synchronous>, transform_indices = @transform_3, window_bounds = array<i64: 1, 256>}, {pipeline_mode = #tpu.pipeline_mode<synchronous>, transform_indices = @transform_4, window_bounds = array<i64: 256, 128>}, {pipeline_mode = #tpu.pipeline_mode<synchronous>, transform_indices = @transform_5, window_bounds = array<i64: 1, 128>}, {pipeline_mode = #tpu.pipeline_mode<synchronous>, transform_indices = @transform_6, window_bounds = array<i64: 128, 16>}, {pipeline_mode = #tpu.pipeline_mode<synchronous>, transform_indices = @transform_7, window_bounds = array<i64: 1, 16>}, {pipeline_mode = #tpu.pipeline_mode<synchronous>, transform_indices = @transform_8, window_bounds = array<i64: 16, 1>}, {pipeline_mode = #tpu.pipeline_mode<synchronous>, transform_indices = @transform_9, window_bounds = array<i64: 1, 1>}, {transform_indices = @transform_10, window_bounds = array<i64: 1, 16>}]} {
    %c0 = arith.constant 0 : index
    %c0_0 = arith.constant 0 : index
    %0 = vector.load %arg1[%c0, %c0_0] : memref<16x32xf32, #tpu.memory_space<vmem>>, vector<16x32xf32>
    %c0_1 = arith.constant 0 : index
    %c0_2 = arith.constant 0 : index
    %1 = vector.load %arg2[%c0_1, %c0_2] : memref<16x32xf32, #tpu.memory_space<vmem>>, vector<16x32xf32>
    %2 = tpu.concatenate %0, %1 in 0 : vector<16x32xf32>, vector<16x32xf32> -> vector<32x32xf32>
    %c0_3 = arith.constant 0 : index
    %c0_4 = arith.constant 0 : index
    %3 = vector.load %arg3[%c0_3, %c0_4] : memref<32x256xf32, #tpu.memory_space<vmem>>, vector<32x256xf32>
    %cst = arith.constant dense<0.000000e+00> : vector<32x256xf32>
    %4 = tpu.matmul %2, %3, %cst {dimension_numbers = #tpu.dot_dimension_numbers<[1], [0], [0], [1], [0, 0, 1, 1], [], []>} : vector<32x32xf32>, vector<32x256xf32>, vector<32x256xf32> -> vector<32x256xf32>
    %c0_5 = arith.constant 0 : index
    %c0_6 = arith.constant 0 : index
    %5 = vector.load %arg4[%c0_5, %c0_6] : memref<1x256xf32, #tpu.memory_space<vmem>>, vector<1x256xf32>
    %6 = vector.broadcast %5 : vector<1x256xf32> to vector<32x256xf32>
    %7 = arith.addf %4, %6 : vector<32x256xf32>
    %cst_7 = arith.constant 0.000000e+00 : f32
    %8 = vector.broadcast %cst_7 : f32 to vector<32x256xf32>
    %9 = arith.maximumf %7, %8 : vector<32x256xf32>
    %c0_8 = arith.constant 0 : index
    %c0_9 = arith.constant 0 : index
    %10 = vector.load %arg5[%c0_8, %c0_9] : memref<256x128xf32, #tpu.memory_space<vmem>>, vector<256x128xf32>
    %cst_10 = arith.constant dense<0.000000e+00> : vector<32x128xf32>
    %11 = tpu.matmul %9, %10, %cst_10 {dimension_numbers = #tpu.dot_dimension_numbers<[1], [0], [0], [1], [0, 0, 1, 1], [], []>} : vector<32x256xf32>, vector<256x128xf32>, vector<32x128xf32> -> vector<32x128xf32>
    %c0_11 = arith.constant 0 : index
    %c0_12 = arith.constant 0 : index
    %12 = vector.load %arg6[%c0_11, %c0_12] : memref<1x128xf32, #tpu.memory_space<vmem>>, vector<1x128xf32>
    %13 = vector.broadcast %12 : vector<1x128xf32> to vector<32x128xf32>
    %14 = arith.addf %11, %13 : vector<32x128xf32>
    %cst_13 = arith.constant 0.000000e+00 : f32
    %15 = vector.broadcast %cst_13 : f32 to vector<32x128xf32>
    %16 = arith.maximumf %14, %15 : vector<32x128xf32>
    %c0_14 = arith.constant 0 : index
    %c0_15 = arith.constant 0 : index
    %17 = vector.load %arg7[%c0_14, %c0_15] : memref<128x16xf32, #tpu.memory_space<vmem>>, vector<128x16xf32>
    %cst_16 = arith.constant dense<0.000000e+00> : vector<32x16xf32>
    %18 = tpu.matmul %16, %17, %cst_16 {dimension_numbers = #tpu.dot_dimension_numbers<[1], [0], [0], [1], [0, 0, 1, 1], [], []>} : vector<32x128xf32>, vector<128x16xf32>, vector<32x16xf32> -> vector<32x16xf32>
    %c0_17 = arith.constant 0 : index
    %c0_18 = arith.constant 0 : index
    %19 = vector.load %arg8[%c0_17, %c0_18] : memref<1x16xf32, #tpu.memory_space<vmem>>, vector<1x16xf32>
    %20 = vector.broadcast %19 : vector<1x16xf32> to vector<32x16xf32>
    %21 = arith.addf %18, %20 : vector<32x16xf32>
    %22 = vector.extract_strided_slice %21 {offsets = [0, 0], sizes = [16, 16], strides = [1, 1]} : vector<32x16xf32> to vector<16x16xf32>
    %23 = vector.extract_strided_slice %21 {offsets = [16, 0], sizes = [16, 16], strides = [1, 1]} : vector<32x16xf32> to vector<16x16xf32>
    %24 = arith.subf %22, %23 : vector<16x16xf32>
    %25 = math.absf %24 : vector<16x16xf32>
    %26 = tpu.transpose %25, [1, 0] : vector<16x16xf32> -> vector<16x16xf32>
    %c0_19 = arith.constant 0 : index
    %c0_20 = arith.constant 0 : index
    %27 = vector.load %arg9[%c0_19, %c0_20] : memref<16x1xf32, #tpu.memory_space<vmem>>, vector<16x1xf32>
    %28 = vector.broadcast %27 : vector<16x1xf32> to vector<16x16xf32>
    %29 = arith.mulf %26, %28 : vector<16x16xf32>
    %cst_21 = arith.constant dense<0.000000e+00> : vector<16xf32>
    %30 = vector.multi_reduction <add>, %29, %cst_21 [0] : vector<16x16xf32> to vector<16xf32>
    %31 = vector.shape_cast %30 : vector<16xf32> to vector<1x16xf32>
    %c0_22 = arith.constant 0 : index
    %c0_23 = arith.constant 0 : index
    %32 = vector.load %arg10[%c0_22, %c0_23] : memref<1x1xf32, #tpu.memory_space<vmem>>, vector<1x1xf32>
    %33 = vector.broadcast %32 : vector<1x1xf32> to vector<1x16xf32>
    %34 = arith.addf %31, %33 : vector<1x16xf32>
    %35 = arith.negf %34 : vector<1x16xf32>
    %36 = math.exp %35 : vector<1x16xf32>
    %cst_24 = arith.constant 1.000000e+00 : f32
    %37 = vector.broadcast %cst_24 : f32 to vector<1x16xf32>
    %38 = arith.addf %37, %36 : vector<1x16xf32>
    %39 = arith.divf %37, %38 : vector<1x16xf32>
    %c0_25 = arith.constant 0 : index
    %c0_26 = arith.constant 0 : index
    %40 = vector.load %arg11[%c0_25, %c0_26] : memref<1x16xf32, #tpu.memory_space<vmem>>, vector<1x16xf32>
    tpu.vector_store %arg11[%c0_25, %c0_26], %39 {strides = array<i32>} : memref<1x16xf32, #tpu.memory_space<vmem>>, vector<1x16xf32>,
    return
  }
  func.func @transform_0(%arg0: i32) -> (i32, i32) {
    %c0_i32 = arith.constant 0 : i32
    %c0_i32_0 = arith.constant 0 : i32
    return %arg0, %c0_i32 : i32, i32
  }
  func.func @transform_1(%arg0: i32) -> (i32, i32) {
    %c0_i32 = arith.constant 0 : i32
    %c0_i32_0 = arith.constant 0 : i32
    return %arg0, %c0_i32 : i32, i32
  }
  func.func @transform_2(%arg0: i32) -> (i32, i32) {
    %c0_i32 = arith.constant 0 : i32
    %c0_i32_0 = arith.constant 0 : i32
    %c0_i32_1 = arith.constant 0 : i32
    return %c0_i32, %c0_i32_0 : i32, i32
  }
  func.func @transform_3(%arg0: i32) -> (i32, i32) {
    %c0_i32 = arith.constant 0 : i32
    %c0_i32_0 = arith.constant 0 : i32
    %c0_i32_1 = arith.constant 0 : i32
    return %c0_i32, %c0_i32_0 : i32, i32
  }
  func.func @transform_4(%arg0: i32) -> (i32, i32) {
    %c0_i32 = arith.constant 0 : i32
    %c0_i32_0 = arith.constant 0 : i32
    %c0_i32_1 = arith.constant 0 : i32
    return %c0_i32, %c0_i32_0 : i32, i32
  }
  func.func @transform_5(%arg0: i32) -> (i32, i32) {
    %c0_i32 = arith.constant 0 : i32
    %c0_i32_0 = arith.constant 0 : i32
    %c0_i32_1 = arith.constant 0 : i32
    return %c0_i32, %c0_i32_0 : i32, i32
  }
  func.func @transform_6(%arg0: i32) -> (i32, i32) {
    %c0_i32 = arith.constant 0 : i32
    %c0_i32_0 = arith.constant 0 : i32
    %c0_i32_1 = arith.constant 0 : i32
    return %c0_i32, %c0_i32_0 : i32, i32
  }
  func.func @transform_7(%arg0: i32) -> (i32, i32) {
    %c0_i32 = arith.constant 0 : i32
    %c0_i32_0 = arith.constant 0 : i32
    %c0_i32_1 = arith.constant 0 : i32
    return %c0_i32, %c0_i32_0 : i32, i32
  }
  func.func @transform_8(%arg0: i32) -> (i32, i32) {
    %c0_i32 = arith.constant 0 : i32
    %c0_i32_0 = arith.constant 0 : i32
    %c0_i32_1 = arith.constant 0 : i32
    return %c0_i32, %c0_i32_0 : i32, i32
  }
  func.func @transform_9(%arg0: i32) -> (i32, i32) {
    %c0_i32 = arith.constant 0 : i32
    %c0_i32_0 = arith.constant 0 : i32
    %c0_i32_1 = arith.constant 0 : i32
    return %c0_i32, %c0_i32_0 : i32, i32
  }
  func.func @transform_10(%arg0: i32) -> (i32, i32) {
    %c0_i32 = arith.constant 0 : i32
    %c0_i32_0 = arith.constant 0 : i32
    return %c0_i32, %arg0 : i32, i32
  }
}

</mosaic_0001>

<bundles_post_ra>
// kernel: tpu_custom_call.1
= control target key start
LH: loop header
LB: loop body
LE: loop exit
PB: predicated region body
PF: predicated region fallthrough
CT: control target
= control target key end

     0   :  { %s683_s0 = inlined_call_operand.vmem [shape: f32[16,32], index: 0, kind: input, shape index: {}]   ;;  %s684_s1 = inlined_call_operand.vmem [shape: f32[16,32], index: 1, kind: input, shape index: {}]   ;;  %s685_s2 = inlined_call_operand.vmem [shape: f32[32,256], index: 2, kind: input, shape index: {}]   ;;  %s686_s3 = inlined_call_operand.vmem [shape: f32[1,256], index: 3, kind: input, shape index: {}]   ;;  %s687_s4 = inlined_call_operand.hbm [shape: f32[256,128], index: 4, kind: input, shape index: {}]   ;;  %s688_s5 = inlined_call_operand.vmem [shape: f32[1,128], index: 5, kind: input, shape index: {}]   ;;  %s689_s6 = inlined_call_operand.vmem [shape: f32[128,16], index: 6, kind: input, shape index: {}]   ;;  %s690_s7 = inlined_call_operand.vmem [shape: f32[1,16], index: 7, kind: input, shape index: {}]   ;;  %s691_s8 = inlined_call_operand.vmem [shape: f32[16,1], index: 8, kind: input, shape index: {}]   ;;  %s692_s9 = inlined_call_operand.<no memory space> [shape: f32[1,1], index: 9, kind: input, shape index: {}]   ;;  %s693_s10 = inlined_call_operand.hbm [shape: f32[1,16], index: 10, kind: output, shape index: {}]  }
   0x1   :  { %v15_v0 = vstv %s692_s9 }
   0x2   :  { %16 = vst [vmem:[#allocation2] sm:$0x1] %v15_v0 }
   0x3   :  { %17 = vsyncpa [#allocation4], 0 }
   0x4   :  { %18 = vsyncpa [#allocation5], 0  ;;  %s31_s17 = sshll.u32 %s687_s4, 4  ;;  %s495_s18 = smov [#allocation3]   ;;  %s32_s17 = int_to_ptr.hbm [resolvable:$true] %s31_s17 }
   0x5   :  { %s33_s19 = sshll.u32 %s495_s18, 4  ;;  %s496_s20 = smov 128   ;;  %s34_s19 = int_to_ptr.vmem [resolvable:$true] %s33_s19 }
   0x6   :  { %s497_s21 = smov 8  }
   0x7   :  { %39 = dma.hbm_to_vmem [thread:$0]  %s32_s17, 4096, %s34_s19, [#allocation4], %s496_s20, %s496_s20, %s497_s21  }
   0x8   :  { %491 = dma.done.wait [#allocation4], 4096  }
   0x9   :  { %492 = vsyncadd [#allocation4], 4294963200  ;;  %v64_v1 = vld [vmem:[%s685_s2 + $0x30] sm:$0xff]  ;;  %v62_v2 = vld [vmem:[%s685_s2 + $0x20] sm:$0xff]  ;;  %vm72_vm0 = vcmask 261120   ;;  %vm348_vm1 = vcmask 130048  }
   0xa   :  { %v65_v3 = vld [vmem:[%s685_s2 + $0x38] sm:$0xff]  ;;  %97 = vmatpush.msra.mxu0 %v64_v1  ;;  %v63_v4 = vld [vmem:[%s685_s2 + $0x28] sm:$0xff]  ;;  %v60_v5 = vld [vmem:[%s685_s2 + $0x10] sm:$0xff]  ;;  %s394_s14 = sshll.u32 %s693_s10, 4  ;;  %vm385_vm5 = vcmask 122880   ;;  %s395_s14 = int_to_ptr.hbm [resolvable:$true] %s394_s14 }
   0xb   :  { %126 = vmatpush.msra.mxu1 %v65_v3  ;;  %v61_v6 = vld [vmem:[%s685_s2 + $0x18] sm:$0xff]  ;;  %v58_v7 = vld [vmem:[%s685_s2] sm:$0xff]  ;;  %v59_v8 = vld [vmem:[%s685_s2 + $0x8] sm:$0xff] }
   0xc   :  { %98 = vmatpush.msra.mxu0 %v62_v2  ;;  %v166_v9 = vld [vmem:[#allocation3 + $0x78] sm:$0xff]  ;;  %v165_v12 = vld [vmem:[#allocation3 + $0x70] sm:$0xff]  ;;  %v164_v14 = vld [vmem:[#allocation3 + $0x68] sm:$0xff] }
   0xd   :  { %127 = vmatpush.msra.mxu1 %v63_v4  ;;  %v182_v10 = vld [vmem:[#allocation3 + $0xf8] sm:$0xff]  ;;  %187 = vmatpush.msra.mxu2 %v166_v9  ;;  %v181_v13 = vld [vmem:[#allocation3 + $0xf0] sm:$0xff]  ;;  %v180_v15 = vld [vmem:[#allocation3 + $0xe8] sm:$0xff] }
   0xe   :  { %99 = vmatpush.msra.mxu0 %v60_v5  ;;  %v54_v11 = vld [vmem:[%s683_s0] sm:$0xff]  ;;  %216 = vmatpush.msra.mxu3 %v182_v10  ;;  %v55_v20 = vld [vmem:[%s683_s0 + $0x8] sm:$0xff]  ;;  %v161_v21 = vld [vmem:[#allocation3 + $0x50] sm:$0xff] }
   0xf   :  { %128 = vmatpush.msra.mxu1 %v61_v6  ;;  %188 = vmatpush.msra.mxu2 %v165_v12  ;;  %v163_v16 = vld [vmem:[#allocation3 + $0x60] sm:$0xff]  ;;  %v162_v18 = vld [vmem:[#allocation3 + $0x58] sm:$0xff]  ;;  %v177_v22 = vld [vmem:[#allocation3 + $0xd0] sm:$0xff] }
  0x10   :  { %100 = vmatpush.msra.mxu0 %v58_v7  ;;  %217 = vmatpush.msra.mxu3 %v181_v13  ;;  %v179_v17 = vld [vmem:[#allocation3 + $0xe0] sm:$0xff]  ;;  %v178_v19 = vld [vmem:[#allocation3 + $0xd8] sm:$0xff]  ;;  %v160_v23 = vld [vmem:[#allocation3 + $0x48] sm:$0xff] }
  0x11   :  { %129 = vmatpush.msra.mxu1 %v59_v8  ;;  %404 = vmatmul.msk.f32.vlgmr.msra.gmra.mxu0 %vm72_vm0, %v54_v11  ;;  %v176_v24 = vld [vmem:[#allocation3 + $0xc8] sm:$0xff]  ;;  %v159_v25 = vld [vmem:[#allocation3 + $0x40] sm:$0xff]  ;;  %v158_v27 = vld [vmem:[#allocation3 + $0x38] sm:$0xff] }
  0x12   :  { %408 = vmatmul.msk.f32.vlgmr.msra.gmra.mxu1 %vm72_vm0, %v54_v11  ;;  %189 = vmatpush.msra.mxu2 %v164_v14  ;;  %v175_v26 = vld [vmem:[#allocation3 + $0xc0] sm:$0xff]  ;;  %v174_v28 = vld [vmem:[#allocation3 + $0xb8] sm:$0xff]  ;;  %v157_v30 = vld [vmem:[#allocation3 + $0x30] sm:$0xff] }
  0x13   :  { %218 = vmatpush.msra.mxu3 %v180_v15  ;;  %v56_v29 = vld [vmem:[%s684_s1] sm:$0xff]  ;;  %v173_v31 = vld [vmem:[#allocation3 + $0xb0] sm:$0xff]  ;;  %v156_v32 = vld [vmem:[#allocation3 + $0x28] sm:$0xff] }
  0x14   :  { %190 = vmatpush.msra.mxu2 %v163_v16  ;;  %v172_v33 = vld [vmem:[#allocation3 + $0xa8] sm:$0xff]  ;;  %v155_v34 = vld [vmem:[#allocation3 + $0x20] sm:$0xff]  ;;  %v154_v36 = vld [vmem:[#allocation3 + $0x18] sm:$0xff] }
  0x15   :  { %219 = vmatpush.msra.mxu3 %v179_v17  ;;  %v171_v35 = vld [vmem:[#allocation3 + $0xa0] sm:$0xff]  ;;  %v153_v38 = vld [vmem:[#allocation3 + $0x10] sm:$0xff]  ;;  %v170_v39 = vld [vmem:[#allocation3 + $0x98] sm:$0xff] }
  0x16   :  { %191 = vmatpush.msra.mxu2 %v162_v18  ;;  %v57_v37 = vld [vmem:[%s684_s1 + $0x8] sm:$0xff]  ;;  %v169_v41 = vld [vmem:[#allocation3 + $0x90] sm:$0xff]  ;;  %v66_v45 = vld [vmem:[%s686_s3] sm:$0x3] }
  0x17   :  { %220 = vmatpush.msra.mxu3 %v178_v19  ;;  %v152_v40 = vld [vmem:[#allocation3 + $0x8] sm:$0xff]  ;;  %v151_v42 = vld [vmem:[#allocation3] sm:$0xff]  ;;  %v608_v46 = vperm.slane %v66_v45, 0  ;;  %v610_v47 = vperm.slane %v66_v45, 1  ;;  %v264_v48 = vld [vmem:[%s689_s6 + $0x78] sm:$0xff] }
  0x18   :  { %192 = vmatpush.msra.mxu2 %v161_v21  ;;  %v168_v43 = vld [vmem:[#allocation3 + $0x88] sm:$0xff]  ;;  %v167_v44 = vld [vmem:[#allocation3 + $0x80] sm:$0xff]  ;;  %269 = vmatpush.msrb.mxu0 %v264_v48  ;;  %v260_v58 = vld [vmem:[%s689_s6 + $0x58] sm:$0xff] }
  0x19   :  { %405 = vmatmul.msk.f32.gmra.mxu0 %vm72_vm0, %v55_v20  ;;  %221 = vmatpush.msra.mxu3 %v177_v22  ;;  %v263_v49 = vld [vmem:[%s689_s6 + $0x70] sm:$0xff]  ;;  %v262_v50 = vld [vmem:[%s689_s6 + $0x68] sm:$0xff]  ;;  %v261_v55 = vld [vmem:[%s689_s6 + $0x60] sm:$0xff] }
  0x1a   :  { %409 = vmatmul.msk.f32.gmra.mxu1 %vm72_vm0, %v55_v20  ;;  %193 = vmatpush.msra.mxu2 %v160_v23  ;;  %v259_v59 = vld [vmem:[%s689_s6 + $0x50] sm:$0xff]  ;;  %v258_v60 = vld [vmem:[%s689_s6 + $0x48] sm:$0xff]  ;;  %v257_v1 = vld [vmem:[%s689_s6 + $0x40] sm:$0xff] }
  0x1b   :  { %222 = vmatpush.msra.mxu3 %v176_v24  ;;  %413 = vmatpush.msrb.mxu1 %v264_v48  ;;  %v256_v4 = vld [vmem:[%s689_s6 + $0x38] sm:$0xff]  ;;  %v255_v5 = vld [vmem:[%s689_s6 + $0x30] sm:$0xff]  ;;  %v254_v6 = vld [vmem:[%s689_s6 + $0x28] sm:$0xff] }
  0x1c   :  { %194 = vmatpush.msra.mxu2 %v159_v25  ;;  %270 = vmatpush.msrb.mxu0 %v263_v49  ;;  %v253_v11 = vld [vmem:[%s689_s6 + $0x20] sm:$0xff]  ;;  %v252_v20 = vld [vmem:[%s689_s6 + $0x18] sm:$0xff]  ;;  %v251_v21 = vld [vmem:[%s689_s6 + $0x10] sm:$0xff] }
  0x1d   :  { %223 = vmatpush.msra.mxu3 %v175_v26  ;;  %414 = vmatpush.msrb.mxu1 %v263_v49  ;;  %v250_v22 = vld [vmem:[%s689_s6 + $0x8] sm:$0xff]  ;;  %v249_v23 = vld [vmem:[%s689_s6] sm:$0xff] }
  0x1e   :  { %195 = vmatpush.msra.mxu2 %v158_v27  ;;  %271 = vmatpush.msrb.mxu0 %v262_v50  ;;  %v437_v24 = vld [vmem:[%s688_s5] ss:$0 sm:$0xff]  ;;  %v335_v48 = vld [vmem:[%s691_s8 + $0x8] sm:$0xff] }
  0x1f   :  { %224 = vmatpush.msra.mxu3 %v174_v28  ;;  %415 = vmatpush.msrb.mxu1 %v262_v50  ;;  %v358_v25 = vld [vmem:[#allocation2] sm:$0x1]  ;;  %v498_v28 = vmov 0  }
  0x20   :  { %196 = vmatpush.msra.mxu2 %v157_v30  ;;  %272 = vmatpush.msrb.mxu0 %v261_v55  ;;  %v438_v50 = vld [vmem:[%s690_s7] ss:$0 sm:$0xff]  ;;  %s499_s7 = smov [#allocation6]  }
  0x21   :  { %406 = vmatmul.msk.f32.gmra.mxu0 %vm72_vm0, %v56_v29  ;;  %225 = vmatpush.msra.mxu3 %v173_v31 }
  0x22   :  { %410 = vmatmul.msk.f32.gmra.mxu1 %vm72_vm0, %v56_v29  ;;  %197 = vmatpush.msra.mxu2 %v156_v32 }
  0x23   :  { %226 = vmatpush.msra.mxu3 %v172_v33  ;;  %416 = vmatpush.msrb.mxu1 %v261_v55 }
  0x24   :  { %198 = vmatpush.msra.mxu2 %v155_v34  ;;  %273 = vmatpush.msrb.mxu0 %v260_v58 }
  0x25   :  { %227 = vmatpush.msra.mxu3 %v171_v35  ;;  %417 = vmatpush.msrb.mxu1 %v260_v58 }
  0x26   :  { %199 = vmatpush.msra.mxu2 %v154_v36  ;;  %274 = vmatpush.msrb.mxu0 %v259_v59 }
  0x27   :  { %228 = vmatpush.msra.mxu3 %v170_v39  ;;  %418 = vmatpush.msrb.mxu1 %v259_v59 }
  0x28   :  { %200 = vmatpush.msra.mxu2 %v153_v38  ;;  %275 = vmatpush.msrb.mxu0 %v258_v60 }
  0x29   :  { %407 = vmatmul.msk.f32.gmra.mxu0 %vm72_vm0, %v57_v37  ;;  %229 = vmatpush.msra.mxu3 %v169_v41 }
  0x2a   :  { %411 = vmatmul.msk.f32.gmra.mxu1 %vm72_vm0, %v57_v37  ;;  %201 = vmatpush.msra.mxu2 %v152_v40 }
  0x2b   :  { %230 = vmatpush.msra.mxu3 %v168_v43  ;;  %419 = vmatpush.msrb.mxu1 %v258_v60 }
  0x2c   :  { %202 = vmatpush.msra.mxu2 %v151_v42  ;;  %276 = vmatpush.msrb.mxu0 %v257_v1 }
  0x2d   :  { %231 = vmatpush.msra.mxu3 %v167_v44  ;;  %420 = vmatpush.msrb.mxu1 %v257_v1 }
  0x2e   :  { %277 = vmatpush.msrb.mxu0 %v256_v4  ;;  %436 = vset.pattern.permute.xlu1 %v498_v28 }
  0x2f   :  { %421 = vmatpush.msrb.mxu1 %v256_v4  ;;  %435 = vset.pattern.permute.xlu0 %v498_v28 }
  0x30   :  { %278 = vmatpush.msrb.mxu0 %v255_v5  ;;  %361 = vperm.xlu1 %436, %v358_v25  }
  0x31   :  { %422 = vmatpush.msrb.mxu1 %v255_v5 }
  0x32   :  { %279 = vmatpush.msrb.mxu0 %v254_v6 }
  0x33   :  { %423 = vmatpush.msrb.mxu1 %v254_v6 }
  0x34   :  { %280 = vmatpush.msrb.mxu0 %v253_v11 }
  0x35   :  { %424 = vmatpush.msrb.mxu1 %v253_v11 }
  0x36   :  { %281 = vmatpush.msrb.mxu0 %v252_v20 }
  0x37   :  { %425 = vmatpush.msrb.mxu1 %v252_v20 }
  0x38   :  { %282 = vmatpush.msrb.mxu0 %v251_v21 }
  0x39   :  { %426 = vmatpush.msrb.mxu1 %v251_v21 }
  0x3a   :  { %283 = vmatpush.msrb.mxu0 %v250_v22 }
  0x3b   :  { %427 = vmatpush.msrb.mxu1 %v250_v22 }
  0x3c   :  { %284 = vmatpush.msrb.mxu0 %v249_v23 }
  0x3d   :  { %428 = vmatpush.msrb.mxu1 %v249_v23 }
  0x8e   :  { %v102_v51 = vpop.f32.mrf.mxu0 }
  0x8f   :  { %v131_v52 = vpop.f32.mrf.mxu1  ;;  %v103_v53 = vadd.f32 %v102_v51, %v608_v46 }
  0x90   :  { %v132_v54 = vadd.f32 %v131_v52, %v610_v47 }
  0x91   :  { %v143_v56 = vmax.f32 %v103_v53, 0.0 }
  0x92   :  { %v144_v57 = vmax.f32 %v132_v54, 0.0 }
  0x93   :  { %203 = vmatmul.f32.vlgmr.msra.gmra.mxu2 %v143_v56 }
  0x94   :  { %232 = vmatmul.f32.vlgmr.msra.gmra.mxu3 %v144_v57 }
  0x96   :  { %v105_v61 = vpop.f32.mrf.mxu0 }
  0x97   :  { %v134_v62 = vpop.f32.mrf.mxu1  ;;  %v106_v63 = vadd.f32 %v105_v61, %v608_v46 }
  0x98   :  { %v135_v0 = vadd.f32 %v134_v62, %v610_v47 }
  0x99   :  { %v145_v2 = vmax.f32 %v106_v63, 0.0 }
  0x9a   :  { %v146_v3 = vmax.f32 %v135_v0, 0.0 }
  0x9b   :  { %206 = vmatmul.f32.gmra.mxu2 %v145_v2 }
  0x9c   :  { %235 = vmatmul.f32.gmra.mxu3 %v146_v3 }
  0x9e   :  { %v108_v7 = vpop.f32.mrf.mxu0 }
  0x9f   :  { %v137_v8 = vpop.f32.mrf.mxu1  ;;  %v109_v9 = vadd.f32 %v108_v7, %v608_v46 }
  0xa0   :  { %v138_v10 = vadd.f32 %v137_v8, %v610_v47 }
  0xa1   :  { %v147_v12 = vmax.f32 %v109_v9, 0.0 }
  0xa2   :  { %v148_v13 = vmax.f32 %v138_v10, 0.0  ;;  %v362_v62 = vpop.permute.xlu1 %361 }
  0xa3   :  { %209 = vmatmul.f32.gmra.mxu2 %v147_v12 }
  0xa4   :  { %238 = vmatmul.f32.gmra.mxu3 %v148_v13  ;;  %v364_v13 = vperm.slane %v362_v62, 0 }
  0xa6   :  { %v111_v14 = vpop.f32.mrf.mxu0 }
  0xa7   :  { %v140_v15 = vpop.f32.mrf.mxu1  ;;  %v112_v16 = vadd.f32 %v111_v14, %v608_v46 }
  0xa8   :  { %v141_v17 = vadd.f32 %v140_v15, %v610_v47  ;;  %v334_v47 = vld [vmem:[%s691_s8] sm:$0xff]  ;;  %s392_s8 = sshll.u32 %s499_s7, 4  ;;  %s393_s8 = int_to_ptr.vmem [resolvable:$true] %s392_s8 }
  0xa9   :  { %v149_v18 = vmax.f32 %v112_v16, 0.0  ;;  %338 = vperm.xlu0 %435, %v334_v47  }
  0xaa   :  { %v150_v19 = vmax.f32 %v141_v17, 0.0 }
  0xab   :  { %212 = vmatmul.f32.gmra.mxu2 %v149_v18 }
  0xac   :  { %241 = vmatmul.f32.gmra.mxu3 %v150_v19 }
  0xb1   :  { %343 = vperm.xlu0 %435, %v335_v48  }
 0x116   :  { %v204_v26 = vpop.f32.mrf.mxu2 }
 0x117   :  { %v233_v27 = vpop.f32.mrf.mxu3  ;;  %v205_v29 = vadd.f32 %v437_v24, %v204_v26 }
 0x119   :  { %v234_v30 = vadd.f32 %v233_v27, %v205_v29 }
 0x11b   :  { %v245_v31 = vmax.f32 %v234_v30, 0.0  ;;  %v339_v63 = vpop.permute.xlu0 %338 }
 0x11d   :  { %285 = vmatmul.f32.vlgmr.msrb.gmra.mxu0 %v245_v31 }
 0x11e   :  { %v207_v32 = vpop.f32.mrf.mxu2 }
 0x11f   :  { %v236_v33 = vpop.f32.mrf.mxu3  ;;  %v208_v34 = vadd.f32 %v437_v24, %v207_v32 }
 0x121   :  { %v237_v35 = vadd.f32 %v236_v33, %v208_v34 }
 0x123   :  { %v246_v36 = vmax.f32 %v237_v35, 0.0  ;;  %v344_v2 = vpop.permute.xlu0 %343 }
 0x125   :  { %288 = vmatmul.f32.vlgmr.msrb.gmra.mxu1 %v246_v36 }
 0x126   :  { %v210_v37 = vpop.f32.mrf.mxu2 }
 0x127   :  { %v239_v38 = vpop.f32.mrf.mxu3  ;;  %v211_v39 = vadd.f32 %v437_v24, %v210_v37 }
 0x129   :  { %v240_v40 = vadd.f32 %v239_v38, %v211_v39 }
 0x12b   :  { %v247_v41 = vmax.f32 %v240_v40, 0.0 }
 0x12d   :  { %291 = vmatmul.f32.gmra.mxu1 %v247_v41 }
 0x12e   :  { %v213_v42 = vpop.f32.mrf.mxu2 }
 0x12f   :  { %v242_v43 = vpop.f32.mrf.mxu3  ;;  %v214_v44 = vadd.f32 %v437_v24, %v213_v42 }
 0x131   :  { %v243_v45 = vadd.f32 %v242_v43, %v214_v44 }
 0x133   :  { %v248_v46 = vmax.f32 %v243_v45, 0.0 }
 0x135   :  { %294 = vmatmul.f32.gmra.mxu1 %v248_v46 }
 0x19a   :  { %v286_v51 = vpop.f32.mrf.mxu0 }
 0x19b   :  { %v287_v53 = vadd.f32 %v438_v50, %v286_v51 }
 0x1a2   :  { %v289_v49 = vpop.f32.mrf.mxu1 }
 0x1a3   :  { %v290_v58 = vadd.f32 %v438_v50, %v289_v49 }
 0x1aa   :  { %v292_v52 = vpop.f32.mrf.mxu1 }
 0x1ab   :  { %v293_v54 = vadd.f32 %v438_v50, %v292_v52 }
 0x1ad   :  { %v298_v55 = vsub.f32 %v287_v53, %v293_v54 }
 0x1af   :  { %v300_v56 = vand.u32 2147483647, %v298_v55 }
 0x1b1   :  { %302 = vxpose.xlu1.b32.start [1/2] (short) (narrow) %v300_v56, 16 }
 0x1b2   :  { %v295_v57 = vpop.f32.mrf.mxu1 }
 0x1b3   :  { %v296_v59 = vadd.f32 %v438_v50, %v295_v57 }
 0x1b5   :  { %v299_v60 = vsub.f32 %v290_v58, %v296_v59 }
 0x1b7   :  { %v301_v61 = vand.u32 2147483647, %v299_v60 }
 0x1b9   :  { %303 = vxpose.xlu1.b32.end [2/2] (short) (narrow) %v301_v61, 16 }
 0x255   :  { %v318_v0 = vpop.trf.xlu1 }
 0x256   :  { %v346_v1 = vmul.f32 %v339_v63, %v318_v0 }
 0x258   :  { %v349_v5 = vsel %vm348_vm1, %v346_v1, 0.0 }
 0x25d   :  { %v319_v3 = vpop.trf.xlu1 }
 0x25e   :  { %v347_v4 = vmul.f32 %v344_v2, %v319_v3 }
 0x260   :  { %v350_v6 = vsel %vm348_vm1, %v347_v4, 0.0 }
 0x261   :  { %v351_v7 = vadd.f32 %v350_v6, %v349_v5 }
 0x263   :  { %v352_v8 = vrot.slane %v351_v7, 4 }
 0x265   :  { %v353_v9 = vadd.f32 %v352_v8, %v351_v7 }
 0x267   :  { %v354_v10 = vrot.slane %v353_v9, 2 }
 0x269   :  { %v355_v11 = vadd.f32 %v354_v10, %v353_v9 }
 0x26b   :  { %v356_v12 = vrot.slane %v355_v11, 1 }
 0x26d   :  { %v357_v14 = vadd.f32 %v356_v12, %v355_v11 }
 0x26f   :  { %v365_v15 = vadd.f32 %v364_v13, %v357_v14 }
 0x271   :  { %v412_v16 = vmul.f32 -1.442695, %v365_v15 }
 0x273   :  { %439 = vpow2.f32 %v412_v16 }
 0x279   :  { %v440_v17 = vpop.eup %439 }
 0x27a   :  { %v369_v18 = vadd.f32 1.0, %v440_v17 }
 0x27c   :  { %441 = vrcp.f32 %v369_v18  ;;  %v381_v22 = vand.u32 2147483648, %v369_v18  ;;  %v379_v24 = vand.u32 2147483647, %v369_v18  ;;  %vm375_vm3 = vweird.f32 %v369_v18 }
 0x27e   :  { %v382_v26 = vor.u32 1.1754944e-38, %v381_v22  ;;  %vm380_vm6 = vcmp.eq.f32.partialorder %v379_v24, 8.507059e+37 }
 0x282   :  { %v442_v19 = vpop.eup %441 }
 0x283   :  { %v371_v20 = vmul.f32 %v442_v19, %v369_v18  ;;  %vm376_vm2 = vweird.f32 %v442_v19 }
 0x284   :  { %vm377_vm4 = vmor %vm375_vm3, %vm376_vm2 }
 0x285   :  { %v372_v21 = vsub.f32 1.0, %v371_v20 }
 0x287   :  { %v373_v23 = vmul.f32 %v442_v19, %v372_v21 }
 0x289   :  { %v374_v25 = vadd.f32 %v442_v19, %v373_v23 }
 0x28b   :  { %v378_v27 = vsel %vm377_vm4, %v442_v19, %v374_v25 }
 0x28c   :  { %v383_v28 = vsel %vm380_vm6, %v382_v26, %v378_v27 }
 0x28d   :  { %386 = vst.msk [vmem:[#allocation6] sm:$0x1] %vm385_vm5, %v383_v28 }
 0x28e   :  { %397 = dma.vmem_to_hbm [thread:$0]  %s393_s8, 16, %s395_s14, [#allocation5]  }
 0x28f   :  { %493 = dma.done.wait [#allocation5], 16  }
 0x290   :  { %494 = vsyncadd [#allocation5], 4294967280 }
 0x291   :  { %402 = vsyncpa [#allocation4], 1 }
 0x292   :  { %403 = vsyncpa [#allocation5], 1 }

</bundles_post_ra>
